<compile_context>
chip_gen: v6e
topology: v6e:2x2x1
jax: 0.10.0
libtpu: 0.0.40
codegen_flags: <defaults>
</compile_context>

<pallas_src>
import jax
import jax.numpy as jnp
from jax.experimental import pallas as pl
from jax.experimental.pallas import tpu as pltpu


def _round_up(x, m):
    return ((x + m - 1) // m) * m


def _nconv_kernel(a_ref, x_ref, o_ref):
    # a_ref: (V_pad, W)     adjacency, same block every step (VMEM resident)
    # x_ref: (W, T_tile)    lane-dense column tile of the folded input
    # o_ref: (V_pad, T_tile) lane-dense output tile
    o_ref[...] = jnp.dot(
        a_ref[...], x_ref[...], preferred_element_type=jnp.float32
    ).astype(o_ref.dtype)


def nconv(
    x,
    A,
    *,
    compute_dtype=None,
    out_dtype=None,
    col_tile=None,
    target_step_bytes=3 * 1024 * 1024,
    vmem_budget_bytes=12 * 1024 * 1024,
):
    """einsum('ncwl,vw->ncvl', x, A) as a lane-dense tiled Pallas TPU matmul.

    x: (N, C, W, L), A: (V, W) -> (N, C, V, L)

    compute_dtype: cast operands (e.g. jnp.bfloat16 - profitable on v5e/v6e/v7x,
      ideally the activations already arrive in bf16 so no extra cast pass is paid).
    out_dtype: dtype of the result (defaults to x.dtype); emitting bf16 halves the
      output-side HBM traffic when downstream tolerates it.
    col_tile: optional manual column-tile width (rounded to a multiple of 128);
      by default it is sized so each grid step moves ~target_step_bytes of HBM.
    """
    N, C, W, L = x.shape
    V, W2 = A.shape
    assert W == W2, "contraction dims must match"

    if out_dtype is None:
        out_dtype = x.dtype
    if compute_dtype is not None:
        # TODO(synk): for real pipelines keep activations in compute_dtype upstream;
        # a standalone astype here is an extra HBM pass over x.
        x = x.astype(compute_dtype)
        A = A.astype(compute_dtype)

    # Pad V to a multiple of 8 once (A is tiny and VMEM-resident) so output
    # stores are unmasked along the sublane dim.
    V_pad = max(_round_up(V, 8), 8)
    if V_pad != V:
        A = jnp.pad(A, ((0, V_pad - V), (0, 0)))

    # Fold (N, C, L) into one lane axis T: column t = ((n*C + c)*L + l).
    # allow_input_fusion below lets XLA fuse this producer into the pallas_call
    # input instead of materializing x2 in HBM.
    T = N * C * L
    x2 = jnp.transpose(x, (2, 0, 1, 3)).reshape(W, T)

    in_itemsize = jnp.dtype(x2.dtype).itemsize
    out_itemsize = jnp.dtype(out_dtype).itemsize
    bytes_per_col = W * in_itemsize + V_pad * out_itemsize

    # Column tile: multiple of 128, sized for ~target_step_bytes of HBM per step,
    # capped by the double-buffered VMEM budget and by the (rounded-up) problem size.
    if col_tile is None:
        col_tile = _round_up(max(target_step_bytes // bytes_per_col, 1), 128)
    col_tile = max(_round_up(col_tile, 128), 128)

    a_bytes = 2 * V_pad * W * in_itemsize                      # double-buffered A
    max_tile = (vmem_budget_bytes - a_bytes) // (2 * bytes_per_col)
    max_tile = max((max_tile // 128) * 128, 128)               # round down, >= 128
    T_tile = min(col_tile, max_tile, _round_up(T, 128))

    grid = (pl.cdiv(T, T_tile),)                               # partial edge block ok

    # Only override the scoped-VMEM limit if the working set exceeds the smallest
    # default (v5e: 16 MiB); stay well under v7x's 64 MiB/TC physical VMEM.
    working_set = 2 * bytes_per_col * T_tile + a_bytes
    vmem_limit = None
    if working_set > 14 * 1024 * 1024:
        vmem_limit = min(int(working_set * 3 // 2), 48 * 1024 * 1024)

    out2 = pl.pallas_call(
        _nconv_kernel,
        out_shape=jax.ShapeDtypeStruct((V_pad, T), out_dtype),
        grid_spec=pltpu.PrefetchScalarGridSpec(
            num_scalar_prefetch=0,
            grid=grid,
            in_specs=[
                # A: identical block index every step -> DMA'd once, stays resident.
                pl.BlockSpec((V_pad, W), lambda t: (0, 0)),
                # x: one lane-dense column tile per step.
                pl.BlockSpec((W, T_tile), lambda t: (0, t)),
            ],
            out_specs=pl.BlockSpec((V_pad, T_tile), lambda t: (0, t)),
        ),
        compiler_params=pltpu.CompilerParams(
            # Independent column tiles -> shardable across v7x's 2 TensorCores.
            dimension_semantics=("parallel",),
            # Let XLA fuse the transpose/reshape producing x2 into the kernel input
            # (A is a parameter / possibly a computed adjacency: keep it materialized).
            allow_input_fusion=[False, True],
            vmem_limit_bytes=vmem_limit,
        ),
    )(A, x2)

    # Un-fold: (V_pad, T) -> slice valid rows -> (V, N, C, L) -> (N, C, V, L).
    # Slice + reshape + transpose fuse into a single XLA copy pass.
    out = out2[:V].reshape(V, N, C, L)
    return jnp.transpose(out, (1, 2, 0, 3))


if __name__ == "__main__":
    key = jax.random.PRNGKey(0)
    kx, ka = jax.random.split(key)

    # Small shapes consistent with the einsum: batch=2, channels=4,
    # W (nodes in) = 16, L (seq) = 16, V (nodes out) = 16.
    N, C, W, L, V = 2, 4, 16, 16, 16
    x = jax.random.normal(kx, (N, C, W, L), dtype=jnp.float32)
    A = jax.random.normal(ka, (V, W), dtype=jnp.float32)

    out = nconv(x, A)
    jax.block_until_ready(out)

    # Correctness check against the plain-JAX einsum reference (f32 path).
    ref = jnp.einsum("ncwl,vw->ncvl", x, A)
    assert out.shape == (N, C, V, L)
    assert jnp.allclose(out, ref, atol=1e-5, rtol=1e-5)

    print("KERNEL_OK")
</pallas_src>

<mosaic_0001>
module attributes {stable_mosaic.version = 11 : i64} {
  func.func @_nconv_kernel(%arg0: i32, %arg1: memref<16x16xf32, #tpu.memory_space<vmem>>, %arg2: memref<16x128xf32, #tpu.memory_space<vmem>>, %arg3: memref<16x128xf32, #tpu.memory_space<vmem>>) attributes {dimension_semantics = [#tpu.dimension_semantics<parallel>], iteration_bounds = array<i64: 1>, scalar_prefetch = 0 : i64, scratch_operands = 0 : i64, tpu.core_type = #tpu.core_type<tc>, window_params = [{pipeline_mode = #tpu.pipeline_mode<synchronous>, transform_indices = @transform_0, window_bounds = array<i64: 16, 16>}, {transform_indices = @transform_1, window_bounds = array<i64: 16, 128>}, {transform_indices = @transform_2, window_bounds = array<i64: 16, 128>}]} {
    %c0 = arith.constant 0 : index
    %c0_0 = arith.constant 0 : index
    %0 = vector.load %arg1[%c0, %c0_0] : memref<16x16xf32, #tpu.memory_space<vmem>>, vector<16x16xf32>
    %c0_1 = arith.constant 0 : index
    %c0_2 = arith.constant 0 : index
    %1 = vector.load %arg2[%c0_1, %c0_2] : memref<16x128xf32, #tpu.memory_space<vmem>>, vector<16x128xf32>
    %cst = arith.constant dense<0.000000e+00> : vector<16x128xf32>
    %2 = tpu.matmul %0, %1, %cst {dimension_numbers = #tpu.dot_dimension_numbers<[1], [0], [0], [1], [0, 0, 1, 1], [], []>} : vector<16x16xf32>, vector<16x128xf32>, vector<16x128xf32> -> vector<16x128xf32>
    %c0_3 = arith.constant 0 : index
    %c0_4 = arith.constant 0 : index
    %3 = vector.load %arg3[%c0_3, %c0_4] : memref<16x128xf32, #tpu.memory_space<vmem>>, vector<16x128xf32>
    tpu.vector_store %arg3[%c0_3, %c0_4], %2 {strides = array<i32>} : memref<16x128xf32, #tpu.memory_space<vmem>>, vector<16x128xf32>,
    return
  }
  func.func @transform_0(%arg0: i32) -> (i32, i32) {
    %c0_i32 = arith.constant 0 : i32
    %c0_i32_0 = arith.constant 0 : i32
    %c0_i32_1 = arith.constant 0 : i32
    return %c0_i32, %c0_i32_0 : i32, i32
  }
  func.func @transform_1(%arg0: i32) -> (i32, i32) {
    %c0_i32 = arith.constant 0 : i32
    %c0_i32_0 = arith.constant 0 : i32
    return %c0_i32, %arg0 : i32, i32
  }
  func.func @transform_2(%arg0: i32) -> (i32, i32) {
    %c0_i32 = arith.constant 0 : i32
    %c0_i32_0 = arith.constant 0 : i32
    return %c0_i32, %arg0 : i32, i32
  }
}

</mosaic_0001>

<bundles_post_ra>
// kernel: tpu_custom_call.1
= control target key start
LH: loop header
LB: loop body
LE: loop exit
PB: predicated region body
PF: predicated region fallthrough
CT: control target
= control target key end

     0   :  { %7 = vsyncpa [#allocation3], 0  ;;  %s268_s0 = inlined_call_operand.hbm [shape: f32[16,16], index: 0, kind: input, shape index: {}]   ;;  %s269_s1 = inlined_call_operand.hbm [shape: f32[16,128], index: 1, kind: input, shape index: {}]   ;;  %s270_s2 = inlined_call_operand.hbm [shape: f32[16,128], index: 2, kind: output, shape index: {}]  }
   0x1   :  { %8 = vsyncpa [#allocation6], 0 }
   0x2   :  { %9 = vsyncpa [#allocation4], 0  ;;  %s230_s9 = smov [#allocation2]  }
   0x3   :  { %s15_s10 = sshll.u32 %s230_s9, 4  ;;  %s16_s10 = int_to_ptr.vmem [resolvable:$true] %s15_s10 }
   0x4   :  { %s172_s11 = scalar_lea.vmem %s16_s10, 256  ;;  %p177_p1 = scmp.lt.s32.totalorder %s16_s10, %s16_s10 }
   0x5   :  { %p173_p0 = scmp.ne.s32.totalorder %s16_s10, %s172_s11  ;;  %p178_p2 = scmp.lt.s32.totalorder %s172_s11, %s172_s11 }
   0x7   :  { %p179_p3 = por %p178_p2, %p177_p1 }
   0x9   :  { %p180_p4 = pnand %p179_p3, %p173_p0 }
   0xb   :  { %183 = shalt.err (!%p180_p4)
}
   0xc   :  { %s231_s12 = smov 128   ;;  %s232_s13 = smov 8  }
   0xd   :  { %21 = dma.hbm_to_vmem [thread:$0]  %s268_s0, 256, %s16_s10, [#allocation3], %s231_s12, %s231_s12, %s232_s13  }
   0xe   :  { %s233_s16 = smov [#allocation5]  }
   0xf   :  { %s27_s17 = sshll.u32 %s233_s16, 4  ;;  %s28_s17 = int_to_ptr.vmem [resolvable:$true] %s27_s17 }
  0x10   :  { %s192_s18 = scalar_lea.vmem %s28_s17, 256  ;;  %p197_p6 = scmp.lt.s32.totalorder %s28_s17, %s28_s17 }
  0x11   :  { %p193_p5 = scmp.ne.s32.totalorder %s28_s17, %s192_s18  ;;  %p198_p7 = scmp.lt.s32.totalorder %s192_s18, %s192_s18 }
  0x13   :  { %p199_p8 = por %p198_p7, %p197_p6 }
  0x15   :  { %p200_p9 = pnand %p199_p8, %p193_p5 }
  0x17   :  { %203 = shalt.err (!%p200_p9)
}
  0x18   :  { %33 = dma.hbm_to_vmem [thread:$0]  %s269_s1, 256, %s28_s17, [#allocation6], %s231_s12, %s231_s12, %s232_s13  }
  0x19   :  { %224 = dma.done.wait [#allocation3], 256  }
  0x1a   :  { %225 = vsyncadd [#allocation3], 4294967040 }
  0x1b   :  { %226 = dma.done.wait [#allocation6], 256  }
  0x1c   :  { %227 = vsyncadd [#allocation6], 4294967040  ;;  %vm44_vm0 = vcmask 130048   ;;  %v43_v0 = vld [vmem:[#allocation5 + $0x8] sm:$0xff]  ;;  %v42_v1 = vld [vmem:[#allocation5] sm:$0xff]  ;;  %s234_s0 = smov [#allocation7]  }
  0x1d   :  { %v40_v2 = vld [vmem:[#allocation2] sm:$0xff]  ;;  %152 = vmatprep.subr.mxu0 %v43_v0  ;;  %v41_v3 = vld [vmem:[#allocation2 + $0x8] sm:$0xff]  ;;  %s133_s21 = sshll.u32 %s234_s0, 4  ;;  %s134_s21 = int_to_ptr.vmem [resolvable:$true] %s133_s21 }
  0x1e   :  { %156 = vmatprep.mubr.msk.f32.mxu0 %vm44_vm0, %v40_v2  ;;  %153 = vmatpush3.msra.mxu0 %v43_v0  ;;  %s204_s1 = scalar_lea.vmem %s134_s21, 256  ;;  %p209_p11 = scmp.lt.s32.totalorder %s134_s21, %s134_s21 }
  0x1f   :  { %154 = vmatprep.subr.mxu0 %v42_v1  ;;  %p205_p10 = scmp.ne.s32.totalorder %s134_s21, %s204_s1  ;;  %p210_p12 = scmp.lt.s32.totalorder %s204_s1, %s204_s1 }
  0x20   :  { %155 = vmatpush3.msra.mxu0 %v42_v1 }
  0x21   :  { %157 = vmatmul.mubr.msk.f32.vlgmr.msra.gmra.mxu0 %vm44_vm0, %v41_v3  ;;  %p211_p13 = por %p210_p12, %p209_p11 }
  0x23   :  { %p212_p0 = pnand %p211_p13, %p205_p10 }
  0xe1   :  { %v158_v4 = vpop.f32.mrf.mxu0 }
  0xe2   :  { %127 = vst [vmem:[#allocation7 + $0x8] sm:$0xff] %v158_v4 }
  0xe3   :  { %v117_v5 = vpop.f32.mrf.mxu0 }
  0xe4   :  { %126 = vst [vmem:[#allocation7] sm:$0xff] %v117_v5 }
  0xe5   :  { %215 = shalt.err (!%p212_p0)
}
  0xe6   :  { %139 = dma.vmem_to_hbm [thread:$0]  %s134_s21, 256, %s270_s2, [#allocation4], %s231_s12, %s231_s12, %s232_s13  }
  0xe7   :  { %228 = dma.done.wait [#allocation4], 256  }
  0xe8   :  { %229 = vsyncadd [#allocation4], 4294967040 }
  0xe9   :  { %143 = vsyncpa [#allocation3], 1 }
  0xea   :  { %144 = vsyncpa [#allocation6], 1 }
  0xeb   :  { %145 = vsyncpa [#allocation4], 1 }

</bundles_post_ra>
